<compile_context>
chip_gen: v6e
topology: v6e:2x2x1
jax: 0.10.0
libtpu: 0.0.40
codegen_flags: <defaults>
</compile_context>

<pallas_src>
import functools

import jax
import jax.numpy as jnp
from jax.experimental import pallas as pl
from jax.experimental.pallas import tpu as pltpu


def _round_up(n, m):
    return ((n + m - 1) // m) * m


def deeponet_kernel(x_ref, w1_ref, b1_ref, w2_ref, b2_ref, o_ref, *, latent_p):
    """One batch tile. All activations are feature-major: (features, TB).

    x_ref : (M+D, TB)   concatenated [x; y] inputs for this tile (f32 or bf16)
    w1_ref: (2H, M+D)   block-diag(branch W1, trunk W1), transposed
    b1_ref: (2H, 1)     concatenated layer-1 biases (f32)
    w2_ref: (2P, 2H)    block-diag(branch W2, trunk W2), transposed
    b2_ref: (2P, 1)     concatenated layer-2 biases (f32)
    o_ref : (1, TB)     lane-dense per-query DeepONet output (f32)
    """
    # Layer 1 (branch|trunk fused): one MXU dot, f32 accumulate, bias add and
    # tanh in f32 on VPU/EUP (safe on v5e).
    h = jnp.tanh(
        jnp.dot(w1_ref[...], x_ref[...], preferred_element_type=jnp.float32)
        + b1_ref[...]
    )  # (2H, TB) f32

    # Layer 2 (branch|trunk fused): second (and last) MXU dot.
    z = (
        jnp.dot(w2_ref[...], h.astype(w2_ref.dtype),
                preferred_element_type=jnp.float32)
        + b2_ref[...]
    )  # (2P, TB) f32

    # DeepONet combine: sublane-split into branch/trunk halves (static slice,
    # P is a multiple of 8 -> no tile crossing), VPU multiply, XLU reduce over
    # the latent (sublane) axis -> lane-dense (1, TB) output tile.
    branch = z[:latent_p, :]
    trunk = z[latent_p:, :]
    o_ref[...] = jnp.sum(branch * trunk, axis=0, keepdims=True).astype(o_ref.dtype)


@functools.partial(jax.jit, static_argnames=("tile_b", "compute_dtype"))
def deeponet_forward(x, y, params, *, tile_b=512, compute_dtype=jnp.float32):
    """x: (B, M) sensor values, y: (B, D) query coords -> (B, 1) float32."""
    B, M = x.shape
    _, D = y.shape
    H = params["bw1"].shape[1]
    P = params["bw2"].shape[1]

    # --- fused (block-diagonal) transposed weights, built once in the wrapper ---
    w1_f = jnp.zeros((M + D, 2 * H), jnp.float32)
    w1_f = w1_f.at[:M, :H].set(params["bw1"]).at[M:, H:].set(params["tw1"])
    w2_f = jnp.zeros((2 * H, 2 * P), jnp.float32)
    w2_f = w2_f.at[:H, :P].set(params["bw2"]).at[H:, P:].set(params["tw2"])
    w1_fT = w1_f.T.astype(compute_dtype)                               # (2H, M+D)
    w2_fT = w2_f.T.astype(compute_dtype)                               # (2P, 2H)
    b1_f = jnp.concatenate([params["bb1"], params["tb1"]], axis=1).T   # (2H, 1) f32
    b2_f = jnp.concatenate([params["bb2"], params["tb2"]], axis=1).T   # (2P, 1) f32

    # --- batch-on-lanes input slab, padded to a whole number of tiles ---
    x_cat_T = jnp.concatenate([x, y], axis=1).T.astype(compute_dtype)  # (M+D, B)
    TB = min(_round_up(tile_b, 128), _round_up(B, 128))
    Bp = _round_up(B, TB)
    if Bp != B:
        x_cat_T = jnp.pad(x_cat_T, ((0, 0), (0, Bp - B)))
    num_tiles = pl.cdiv(Bp, TB)

    kernel = functools.partial(deeponet_kernel, latent_p=P)

    out = pl.pallas_call(
        kernel,
        out_shape=jax.ShapeDtypeStruct((1, Bp), jnp.float32),
        grid=(num_tiles,),
        in_specs=[
            pl.BlockSpec((M + D, TB), lambda i: (0, i)),   # streamed per tile
            pl.BlockSpec(w1_fT.shape, lambda i: (0, 0)),   # VMEM-resident weights
            pl.BlockSpec(b1_f.shape, lambda i: (0, 0)),
            pl.BlockSpec(w2_fT.shape, lambda i: (0, 0)),
            pl.BlockSpec(b2_f.shape, lambda i: (0, 0)),
        ],
        out_specs=pl.BlockSpec((1, TB), lambda i: (0, i)),
        compiler_params=pltpu.CompilerParams(
            dimension_semantics=("parallel",)),
    )(x_cat_T, w1_fT, b1_f, w2_fT, b2_f)

    return out[0, :B][:, None]


def init_params(key, m, d, hidden, p):
    ks = jax.random.split(key, 8)
    scale = 0.1
    return {
        # branch net:  M -> H -> P
        "bw1": scale * jax.random.normal(ks[0], (m, hidden), jnp.float32),
        "bb1": scale * jax.random.normal(ks[1], (1, hidden), jnp.float32),
        "bw2": scale * jax.random.normal(ks[2], (hidden, p), jnp.float32),
        "bb2": scale * jax.random.normal(ks[3], (1, p), jnp.float32),
        # trunk net:   D -> H -> P
        "tw1": scale * jax.random.normal(ks[4], (d, hidden), jnp.float32),
        "tb1": scale * jax.random.normal(ks[5], (1, hidden), jnp.float32),
        "tw2": scale * jax.random.normal(ks[6], (hidden, p), jnp.float32),
        "tb2": scale * jax.random.normal(ks[7], (1, p), jnp.float32),
    }


def deeponet_ref(x, y, prm, compute_dtype=jnp.float32):
    """Pure-JAX reference mirroring the PyTorch forward semantics
    (optionally casting matmul inputs to bf16 like the kernel's bf16 mode)."""
    def mlp(inp, w1, b1, w2, b2):
        h = jnp.tanh(
            jnp.dot(inp.astype(compute_dtype), w1.astype(compute_dtype),
                    preferred_element_type=jnp.float32) + b1)
        return jnp.dot(h.astype(compute_dtype), w2.astype(compute_dtype),
                       preferred_element_type=jnp.float32) + b2

    branch = mlp(x, prm["bw1"], prm["bb1"], prm["bw2"], prm["bb2"])
    trunk = mlp(y, prm["tw1"], prm["tb1"], prm["tw2"], prm["tb2"])
    return jnp.sum(branch * trunk, axis=1, keepdim=True) \
        if False else jnp.sum(branch * trunk, axis=1, keepdims=True)


if __name__ == "__main__":
    # Small but multi-tile: B=200 queries with tile_b=128 -> 2 grid steps,
    # exercising both the software pipeline and the batch-padding path.
    B, M, D, H, P = 200, 16, 2, 32, 32

    key = jax.random.PRNGKey(0)
    kx, ky, kp = jax.random.split(key, 3)
    x = jax.random.normal(kx, (B, M), jnp.float32)   # branch input (sensor values)
    y = jax.random.normal(ky, (B, D), jnp.float32)   # trunk input (query coords)
    params = init_params(kp, M, D, H, P)

    # float32 path: exact match against the reference.
    out = jax.block_until_ready(deeponet_forward(x, y, params, tile_b=128))
    ref = deeponet_ref(x, y, params)
    assert out.shape == (B, 1), out.shape
    assert jnp.allclose(out, ref, atol=1e-5, rtol=1e-5), \
        float(jnp.max(jnp.abs(out - ref)))

    # bf16 matmul-input path (v6e/v7x HBM/MXU optimization; f32 elsewhere,
    # so it also lowers cleanly on v5e). Compared against a bf16-casting ref.
    out_bf16 = jax.block_until_ready(
        deeponet_forward(x, y, params, tile_b=128, compute_dtype=jnp.bfloat16))
    ref_bf16 = deeponet_ref(x, y, params, compute_dtype=jnp.bfloat16)
    assert out_bf16.shape == (B, 1), out_bf16.shape
    assert jnp.allclose(out_bf16, ref_bf16, atol=1e-3, rtol=1e-2), \
        float(jnp.max(jnp.abs(out_bf16 - ref_bf16)))

    print("KERNEL_OK")
</pallas_src>

<mosaic_0001>
module attributes {stable_mosaic.version = 11 : i64} {
  func.func @deeponet_kernel(%arg0: i32, %arg1: memref<18x128xf32, #tpu.memory_space<vmem>>, %arg2: memref<64x18xf32, #tpu.memory_space<vmem>>, %arg3: memref<64x1xf32, #tpu.memory_space<vmem>>, %arg4: memref<64x64xf32, #tpu.memory_space<vmem>>, %arg5: memref<64x1xf32, #tpu.memory_space<vmem>>, %arg6: memref<1x128xf32, #tpu.memory_space<vmem>>) attributes {dimension_semantics = [#tpu.dimension_semantics<parallel>], iteration_bounds = array<i64: 2>, scalar_prefetch = 0 : i64, scratch_operands = 0 : i64, tpu.core_type = #tpu.core_type<tc>, window_params = [{transform_indices = @transform_0, window_bounds = array<i64: 18, 128>}, {pipeline_mode = #tpu.pipeline_mode<synchronous>, transform_indices = @transform_1, window_bounds = array<i64: 64, 18>}, {pipeline_mode = #tpu.pipeline_mode<synchronous>, transform_indices = @transform_2, window_bounds = array<i64: 64, 1>}, {pipeline_mode = #tpu.pipeline_mode<synchronous>, transform_indices = @transform_3, window_bounds = array<i64: 64, 64>}, {pipeline_mode = #tpu.pipeline_mode<synchronous>, transform_indices = @transform_4, window_bounds = array<i64: 64, 1>}, {transform_indices = @transform_5, window_bounds = array<i64: 1, 128>}]} {
    %c0 = arith.constant 0 : index
    %c0_0 = arith.constant 0 : index
    %0 = vector.load %arg2[%c0, %c0_0] : memref<64x18xf32, #tpu.memory_space<vmem>>, vector<64x18xf32>
    %c0_1 = arith.constant 0 : index
    %c0_2 = arith.constant 0 : index
    %1 = vector.load %arg1[%c0_1, %c0_2] : memref<18x128xf32, #tpu.memory_space<vmem>>, vector<18x128xf32>
    %cst = arith.constant dense<0.000000e+00> : vector<64x128xf32>
    %2 = tpu.matmul %0, %1, %cst {dimension_numbers = #tpu.dot_dimension_numbers<[1], [0], [0], [1], [0, 0, 1, 1], [], []>} : vector<64x18xf32>, vector<18x128xf32>, vector<64x128xf32> -> vector<64x128xf32>
    %c0_3 = arith.constant 0 : index
    %c0_4 = arith.constant 0 : index
    %3 = vector.load %arg3[%c0_3, %c0_4] : memref<64x1xf32, #tpu.memory_space<vmem>>, vector<64x1xf32>
    %4 = vector.broadcast %3 : vector<64x1xf32> to vector<64x128xf32>
    %5 = arith.addf %2, %4 : vector<64x128xf32>
    %6 = math.tanh %5 : vector<64x128xf32>
    %c0_5 = arith.constant 0 : index
    %c0_6 = arith.constant 0 : index
    %7 = vector.load %arg4[%c0_5, %c0_6] : memref<64x64xf32, #tpu.memory_space<vmem>>, vector<64x64xf32>
    %cst_7 = arith.constant dense<0.000000e+00> : vector<64x128xf32>
    %8 = tpu.matmul %7, %6, %cst_7 {dimension_numbers = #tpu.dot_dimension_numbers<[1], [0], [0], [1], [0, 0, 1, 1], [], []>} : vector<64x64xf32>, vector<64x128xf32>, vector<64x128xf32> -> vector<64x128xf32>
    %c0_8 = arith.constant 0 : index
    %c0_9 = arith.constant 0 : index
    %9 = vector.load %arg5[%c0_8, %c0_9] : memref<64x1xf32, #tpu.memory_space<vmem>>, vector<64x1xf32>
    %10 = vector.broadcast %9 : vector<64x1xf32> to vector<64x128xf32>
    %11 = arith.addf %8, %10 : vector<64x128xf32>
    %12 = vector.extract_strided_slice %11 {offsets = [0, 0], sizes = [32, 128], strides = [1, 1]} : vector<64x128xf32> to vector<32x128xf32>
    %13 = vector.extract_strided_slice %11 {offsets = [32, 0], sizes = [32, 128], strides = [1, 1]} : vector<64x128xf32> to vector<32x128xf32>
    %14 = arith.mulf %12, %13 : vector<32x128xf32>
    %cst_10 = arith.constant dense<0.000000e+00> : vector<128xf32>
    %15 = vector.multi_reduction <add>, %14, %cst_10 [0] : vector<32x128xf32> to vector<128xf32>
    %16 = vector.shape_cast %15 : vector<128xf32> to vector<1x128xf32>
    %c0_11 = arith.constant 0 : index
    %c0_12 = arith.constant 0 : index
    %17 = vector.load %arg6[%c0_11, %c0_12] : memref<1x128xf32, #tpu.memory_space<vmem>>, vector<1x128xf32>
    tpu.vector_store %arg6[%c0_11, %c0_12], %16 {strides = array<i32>} : memref<1x128xf32, #tpu.memory_space<vmem>>, vector<1x128xf32>,
    return
  }
  func.func @transform_0(%arg0: i32) -> (i32, i32) {
    %c0_i32 = arith.constant 0 : i32
    %c0_i32_0 = arith.constant 0 : i32
    return %c0_i32, %arg0 : i32, i32
  }
  func.func @transform_1(%arg0: i32) -> (i32, i32) {
    %c0_i32 = arith.constant 0 : i32
    %c0_i32_0 = arith.constant 0 : i32
    %c0_i32_1 = arith.constant 0 : i32
    return %c0_i32, %c0_i32_0 : i32, i32
  }
  func.func @transform_2(%arg0: i32) -> (i32, i32) {
    %c0_i32 = arith.constant 0 : i32
    %c0_i32_0 = arith.constant 0 : i32
    %c0_i32_1 = arith.constant 0 : i32
    return %c0_i32, %c0_i32_0 : i32, i32
  }
  func.func @transform_3(%arg0: i32) -> (i32, i32) {
    %c0_i32 = arith.constant 0 : i32
    %c0_i32_0 = arith.constant 0 : i32
    %c0_i32_1 = arith.constant 0 : i32
    return %c0_i32, %c0_i32_0 : i32, i32
  }
  func.func @transform_4(%arg0: i32) -> (i32, i32) {
    %c0_i32 = arith.constant 0 : i32
    %c0_i32_0 = arith.constant 0 : i32
    %c0_i32_1 = arith.constant 0 : i32
    return %c0_i32, %c0_i32_0 : i32, i32
  }
  func.func @transform_5(%arg0: i32) -> (i32, i32) {
    %c0_i32 = arith.constant 0 : i32
    %c0_i32_0 = arith.constant 0 : i32
    return %c0_i32, %arg0 : i32, i32
  }
}

</mosaic_0001>

<bundles_post_ra>
// kernel: deeponet_forward.1
= control target key start
LH: loop header
LB: loop body
LE: loop exit
PB: predicated region body
PF: predicated region fallthrough
CT: control target
= control target key end

     0   :  { %s932_s18 = smov 0   ;;  %s934_s19 = smov 0   ;;  %s1098_s0 = inlined_call_operand.vmem [shape: f32[18,256], index: 0, kind: input, shape index: {}]   ;;  %s1099_s1 = inlined_call_operand.vmem [shape: f32[64,18], index: 1, kind: input, shape index: {}]   ;;  %s1100_s2 = inlined_call_operand.vmem [shape: f32[64,1], index: 2, kind: input, shape index: {}]   ;;  %s1101_s3 = inlined_call_operand.vmem [shape: f32[64,64], index: 3, kind: input, shape index: {}]   ;;  %s1102_s4 = inlined_call_operand.vmem [shape: f32[64,1], index: 4, kind: input, shape index: {}]   ;;  %s1103_s5 = inlined_call_operand.vmem [shape: f32[1,256], index: 5, kind: output, shape index: {}]  }
   0x1   :  { %s936_s20 = smov 0  }
   0x2 LB: > { %s718_s21 = sadd.s32 4294967295, %s899_s20   ;;  %s949_s22 = sadd.s32 1, %s899_s20   ;;  %s899_s20 = sphi %s936_s20, %s1106_s20   ;;  %s895_s19 = sphi %s934_s19, %s1105_s19   ;;  %s891_s18 = sphi %s932_s18, %s1104_s18  }
   0x3   : > { %s19_s23 = ssub.s32 %s899_s20, %s949_s22  ;;  %s22_s24 = sadd.s32 1, %s895_s19 }
   0x4   : > { %p20_p0 = scmp.eq.s32.totalorder %s19_s23, 0  ;;  %p29_p1 = scmp.ne.s32.totalorder %s895_s19, %s891_s18 }
   0x5   : > { %p30_p2 = scmp.eq.s32.totalorder %s899_s20, 0  ;;  %p721_p4 = scmp.ge.s32.totalorder %s899_s20, 2 }
   0x6   : > { %s958_s25 = scalar_select %p20_p0, %s895_s19, %s22_s24  }
   0x7   : > { %p31_p3 = por %p30_p2, %p29_p1  ;;  %177 = sbr.rel (%p721_p4) target bundleno = 18 (0x12), region = 32 }
   0xc   : > { %180 = sbr.rel (!%p31_p3) target bundleno = 18 (0x12), region = 36  ;;  %s182_s26 = sand.u32 (%p31_p3), 1, %s895_s19  }
   0xd   : > { %s722_s27 = sshll.u32 (%p31_p3), %s899_s20, 3  ;;  %s832_s28 = smul.u32 (%p31_p3), 24, %s182_s26 }
   0xe   : > { %s186_s6 = scalar_lea.vmem (%p31_p3), %s1098_s0, %s722_s27 }
   0xf   : > { %v219_v0 = vld [vmem:[%s186_s6] sm:$0xff] (%p31_p3)  ;;  %v221_v1 = vld [vmem:[%s186_s6 + $0x10] sm:$0xff] (%p31_p3)  ;;  %s184_s7 = scalar_lea.vmem (%p31_p3), [#allocation2], %s832_s28 }
  0x10   : > { %v223_v2 = vld [vmem:[%s186_s6 + $0x20] sm:$0xff] (%p31_p3)  ;;  %220 = vst [vmem:[%s184_s7] sm:$0xff] (%p31_p3), %v219_v0  ;;  %222 = vst [vmem:[%s184_s7 + $0x8] sm:$0xff] (%p31_p3), %v221_v1 }
  0x11   : > { %224 = vst [vmem:[%s184_s7 + $0x10] sm:$0xff] %v223_v2 }
  0x12 PF: > { %p723_p5 = scmp.ge.s32.totalorder %s899_s20, 1  ;;  %p229_p6 = scmp.lt.s32.totalorder %s899_s20, 3 }
  0x14   : > { %p230_p7 = pnand %p723_p5, %p229_p6 }
  0x15   : > { %s236_s8 = sand.u32 (!%p230_p7), 1, %s891_s18   ;;  %p261_p8 = scmp.lt.s32.totalorder (!%p230_p7), %s718_s21, 1 }
  0x16   : > { %233 = sbr.rel (%p230_p7) target bundleno = 497 (0x1f1), region = 74 }
  0x17   : > { %s833_s11 = smul.u32 (!%p230_p7), 24, %s236_s8 }
  0x19   : > { %s238_s16 = scalar_lea.vmem (!%p230_p7), [#allocation2], %s833_s11 }
  0x1b   : > { %v264_v3 = vld [vmem:[%s1099_s1] sm:$0xff]  ;;  %vm323_vm0 = vcmask 146432   ;;  %vm348_vm1 = vcmask 1041408   ;;  %v901_v4 = vmov 0   ;;  %v282_v5 = vld [vmem:[%s1100_s2 + $0x38] sm:$0xff]  ;;  %v280_v6 = vld [vmem:[%s1100_s2 + $0x28] sm:$0xff] }
  0x1c   : > { %776 = vmatprep.mubr.msk.f32.mxu0 %vm323_vm0, %v264_v3  ;;  %859 = vset.pattern.permute.xlu0 %v901_v4  ;;  %v274_v7 = vld [vmem:[%s238_s16 + $0x10] sm:$0x3]  ;;  %v273_v8 = vld [vmem:[%s238_s16 + $0x8] sm:$0xff]  ;;  %v272_v11 = vld [vmem:[%s238_s16] sm:$0xff]  ;;  %vm521_vm2 = vcmask 523264   ;;  %s1108_s21 = smov (!%p261_p8, %s718_s21), 1 }
  0x1d   : > { %860 = vset.pattern.permute.xlu1 %v901_v4  ;;  %320 = vperm.xlu0 %859, %v282_v5   ;;  %v281_v9 = vld [vmem:[%s1100_s2 + $0x30] sm:$0xff]  ;;  %v279_v10 = vld [vmem:[%s1100_s2 + $0x20] sm:$0xff]  ;;  %v265_v12 = vld [vmem:[%s1099_s1 + $0x8] sm:$0xff]  ;;  %s263_s17 = scalar_lea.vmem %s1103_s5, %s1108_s21 }
  0x1e   : > { %310 = vperm.xlu1 %860, %v280_v6   ;;  %770 = vmatprep.subr.msk.mxu0 %vm348_vm1, %v274_v7  ;;  %v278_v13 = vld [vmem:[%s1100_s2 + $0x18] sm:$0xff]  ;;  %v266_v14 = vld [vmem:[%s1099_s1 + $0x10] sm:$0xff]  ;;  %v276_v17 = vld [vmem:[%s1100_s2 + $0x8] sm:$0xff] }
  0x1f   : > { %771 = vmatpush3.msk.msra.mxu0 %vm348_vm1, %v274_v7  ;;  %v277_v15 = vld [vmem:[%s1100_s2 + $0x10] sm:$0xff]  ;;  %v267_v16 = vld [vmem:[%s1099_s1 + $0x18] sm:$0xff]  ;;  %v268_v18 = vld [vmem:[%s1099_s1 + $0x20] sm:$0xff] }
  0x20   : > { %772 = vmatprep.subr.mxu0 %v273_v8  ;;  %v275_v19 = vld [vmem:[%s1100_s2] sm:$0xff]  ;;  %v269_v20 = vld [vmem:[%s1099_s1 + $0x28] sm:$0xff]  ;;  %v270_v22 = vld [vmem:[%s1099_s1 + $0x30] sm:$0xff] }
  0x21   : > { %315 = vperm.xlu0 %859, %v281_v9   ;;  %773 = vmatpush3.msra.mxu0 %v273_v8  ;;  %v473_v21 = vld [vmem:[%s1102_s4] sm:$0xff]  ;;  %v474_v23 = vld [vmem:[%s1102_s4 + $0x8] sm:$0xff]  ;;  %v271_v24 = vld [vmem:[%s1099_s1 + $0x38] sm:$0xff] }
  0x22   : > { %305 = vperm.xlu1 %860, %v279_v10   ;;  %774 = vmatprep.subr.mxu0 %v272_v11  ;;  %v477_v25 = vld [vmem:[%s1102_s4 + $0x20] sm:$0xff]  ;;  %v478_v26 = vld [vmem:[%s1102_s4 + $0x28] sm:$0xff]  ;;  %v475_v27 = vld [vmem:[%s1102_s4 + $0x10] sm:$0xff] }
  0x23   : > { %775 = vmatpush3.msra.mxu0 %v272_v11  ;;  %v479_v28 = vld [vmem:[%s1102_s4 + $0x30] sm:$0xff]  ;;  %v476_v29 = vld [vmem:[%s1102_s4 + $0x18] sm:$0xff]  ;;  %v465_v31 = vld [vmem:[%s1101_s3] sm:$0xff] }
  0x24   : > { %777 = vmatmul.mubr.msk.f32.vlgmr.msra.gmra.mxu0 %vm323_vm0, %v265_v12  ;;  %v480_v30 = vld [vmem:[%s1102_s4 + $0x38] sm:$0xff]  ;;  %v467_v32 = vld [vmem:[%s1101_s3 + $0x10] sm:$0xff]  ;;  %v466_v1 = vld [vmem:[%s1101_s3 + $0x8] sm:$0xff] }
  0x25   : > { %300 = vperm.xlu0 %859, %v278_v13   ;;  %779 = vmatprep.mubr.msk.f32.mxu0 %vm323_vm0, %v266_v14  ;;  %v468_v2 = vld [vmem:[%s1101_s3 + $0x18] sm:$0xff]  ;;  %v469_v3 = vld [vmem:[%s1101_s3 + $0x20] sm:$0xff]  ;;  %v470_v4 = vld [vmem:[%s1101_s3 + $0x28] sm:$0xff] }
  0x26   : > { %295 = vperm.xlu1 %860, %v277_v15   ;;  %807 = vmatprep.mubr.msk.f32.mxu1 %vm521_vm2, %v467_v32  ;;  %v471_v5 = vld [vmem:[%s1101_s3 + $0x30] sm:$0xff]  ;;  %v472_v6 = vld [vmem:[%s1101_s3 + $0x38] sm:$0xff] }
  0x28   : > { %780 = vmatmul.mubr.msk.f32.gmra.mxu0 %vm323_vm0, %v267_v16 }
  0x29   : > { %290 = vperm.xlu0 %859, %v276_v17   ;;  %782 = vmatprep.mubr.msk.f32.mxu0 %vm323_vm0, %v268_v18 }
  0x2a   : > { %285 = vperm.xlu1 %860, %v275_v19  }
  0x2c   : > { %783 = vmatmul.mubr.msk.f32.gmra.mxu0 %vm323_vm0, %v269_v20 }
  0x2d   : > { %483 = vperm.xlu0 %859, %v473_v21   ;;  %785 = vmatprep.mubr.msk.f32.mxu0 %vm323_vm0, %v270_v22 }
  0x2e   : > { %488 = vperm.xlu1 %860, %v474_v23  }
  0x30   : > { %786 = vmatmul.mubr.msk.f32.gmra.mxu0 %vm323_vm0, %v271_v24 }
  0x31   : > { %503 = vperm.xlu0 %859, %v477_v25   ;;  %804 = vmatprep.mubr.msk.f32.mxu0 %vm521_vm2, %v465_v31 }
  0x32   : > { %508 = vperm.xlu1 %860, %v478_v26  }
  0x35   : > { %493 = vperm.xlu0 %859, %v475_v27  }
  0x36   : > { %513 = vperm.xlu1 %860, %v479_v28  }
  0x39   : > { %498 = vperm.xlu0 %859, %v476_v29  }
  0x3a   : > { %518 = vperm.xlu1 %860, %v480_v30  }
  0x98   : > { %v321_v35 = vpop.permute.xlu0 %320 }
  0x99   : > { %v311_v37 = vpop.permute.xlu1 %310 }
  0x9c   : > { %v316_v40 = vpop.permute.xlu0 %315 }
  0x9d   : > { %v306_v42 = vpop.permute.xlu1 %305 }
  0xa0   : > { %v301_v48 = vpop.permute.xlu0 %300 }
  0xa1   : > { %v296_v50 = vpop.permute.xlu1 %295 }
  0xa4   : > { %v291_v53 = vpop.permute.xlu0 %290 }
  0xa5   : > { %v286_v55 = vpop.permute.xlu1 %285 }
  0xa8   : > { %v484_v8 = vpop.permute.xlu0 %483 }
  0xa9   : > { %v489_v7 = vpop.permute.xlu1 %488 }
  0xac   : > { %v504_v10 = vpop.permute.xlu0 %503 }
  0xad   : > { %v509_v9 = vpop.permute.xlu1 %508 }
  0xb0   : > { %v494_v17 = vpop.permute.xlu0 %493 }
  0xb1   : > { %v514_v14 = vpop.permute.xlu1 %513 }
  0xb4   : > { %v499_v31 = vpop.permute.xlu0 %498 }
  0xb5   : > { %v519_v25 = vpop.permute.xlu1 %518 }
  0xe4   : > { %v778_v33 = vpop.f32.mrf.mxu0 }
  0xe5   : > { %v424_v54 = vadd.f32 %v778_v33, %v291_v53 }
  0xe6   : > { %v418_v34 = vpop.f32.mrf.mxu0 }
  0xe7   : > { %v419_v56 = vadd.f32 %v418_v34, %v286_v55 }
  0xe8   : > { %v781_v36 = vpop.f32.mrf.mxu0 }
  0xe9   : > { %v434_v51 = vadd.f32 %v781_v36, %v301_v48 }
  0xea   : > { %v428_v38 = vpop.f32.mrf.mxu0 }
  0xeb   : > { %v429_v52 = vadd.f32 %v428_v38, %v296_v50 }
  0xec   : > { %v784_v39 = vpop.f32.mrf.mxu0 }
  0xed   : > { %v444_v46 = vadd.f32 %v784_v39, %v311_v37 }
  0xee   : > { %v438_v41 = vpop.f32.mrf.mxu0 }
  0xef   : > { %v439_v49 = vadd.f32 %v438_v41, %v306_v42 }
  0xf0   : > { %v787_v43 = vpop.f32.mrf.mxu0 }
  0xf1   : > { %v454_v44 = vadd.f32 %v787_v43, %v321_v35 }
  0xf2   : > { %v448_v45 = vpop.f32.mrf.mxu0 }
  0xf3   : > { %861 = vtanh.f32 %v454_v44  ;;  %v449_v47 = vadd.f32 %v448_v45, %v316_v40 }
  0xf5   : > { %863 = vtanh.f32 %v449_v47 }
  0xf6   : > { %865 = vtanh.f32 %v444_v46 }
  0xf7   : > { %867 = vtanh.f32 %v439_v49 }
  0xf8   : > { %869 = vtanh.f32 %v434_v51 }
  0xf9   : > { %871 = vtanh.f32 %v429_v52 }
  0xfa   : > { %873 = vtanh.f32 %v424_v54 }
  0xfb   : > { %875 = vtanh.f32 %v419_v56 }
 0x100   : > { %v862_v57 = vpop.eup %861 }
 0x101   : > { %788 = vmatprep.subr.mxu0 %v862_v57  ;;  %816 = vmatprep.subr.mxu1 %v862_v57 }
 0x102   : > { %v864_v58 = vpop.eup %863  ;;  %789 = vmatpush3.msra.mxu0 %v862_v57  ;;  %824 = vmatpush3.msra.mxu1 %v862_v57 }
 0x103   : > { %790 = vmatprep.subr.mxu0 %v864_v58  ;;  %817 = vmatprep.subr.mxu1 %v864_v58  ;;  %v866_v59 = vpop.eup %865 }
 0x104   : > { %791 = vmatpush3.msra.mxu0 %v864_v58  ;;  %825 = vmatpush3.msra.mxu1 %v864_v58  ;;  %v868_v60 = vpop.eup %867 }
 0x105   : > { %792 = vmatprep.subr.mxu0 %v866_v59  ;;  %818 = vmatprep.subr.mxu1 %v866_v59  ;;  %v870_v61 = vpop.eup %869 }
 0x106   : > { %793 = vmatpush3.msra.mxu0 %v866_v59  ;;  %826 = vmatpush3.msra.mxu1 %v866_v59  ;;  %v872_v62 = vpop.eup %871 }
 0x107   : > { %794 = vmatprep.subr.mxu0 %v868_v60  ;;  %819 = vmatprep.subr.mxu1 %v868_v60  ;;  %v874_v63 = vpop.eup %873 }
 0x108   : > { %795 = vmatpush3.msra.mxu0 %v868_v60  ;;  %827 = vmatpush3.msra.mxu1 %v868_v60  ;;  %v876_v0 = vpop.eup %875 }
 0x109   : > { %796 = vmatprep.subr.mxu0 %v870_v61  ;;  %820 = vmatprep.subr.mxu1 %v870_v61 }
 0x10a   : > { %797 = vmatpush3.msra.mxu0 %v870_v61  ;;  %828 = vmatpush3.msra.mxu1 %v870_v61 }
 0x10b   : > { %798 = vmatprep.subr.mxu0 %v872_v62  ;;  %821 = vmatprep.subr.mxu1 %v872_v62 }
 0x10c   : > { %799 = vmatpush3.msra.mxu0 %v872_v62  ;;  %829 = vmatpush3.msra.mxu1 %v872_v62 }
 0x10d   : > { %800 = vmatprep.subr.mxu0 %v874_v63  ;;  %822 = vmatprep.subr.mxu1 %v874_v63 }
 0x10e   : > { %801 = vmatpush3.msra.mxu0 %v874_v63  ;;  %830 = vmatpush3.msra.mxu1 %v874_v63 }
 0x10f   : > { %802 = vmatprep.subr.mxu0 %v876_v0  ;;  %823 = vmatprep.subr.mxu1 %v876_v0 }
 0x110   : > { %803 = vmatpush3.msra.mxu0 %v876_v0  ;;  %831 = vmatpush3.msra.mxu1 %v876_v0 }
 0x111   : > { %805 = vmatmul.mubr.msk.f32.vlgmr.msra.gmra.mxu0 %vm521_vm2, %v466_v1  ;;  %808 = vmatmul.mubr.msk.f32.vlgmr.msra.gmra.mxu1 %vm521_vm2, %v468_v2 }
 0x112   : > { %810 = vmatprep.mubr.msk.f32.mxu1 %vm521_vm2, %v469_v3 }
 0x115   : > { %811 = vmatmul.mubr.msk.f32.gmra.mxu1 %vm521_vm2, %v470_v4 }
 0x116   : > { %813 = vmatprep.mubr.msk.f32.mxu1 %vm521_vm2, %v471_v5 }
 0x119   : > { %814 = vmatmul.mubr.msk.f32.gmra.mxu1 %vm521_vm2, %v472_v6 }
 0x1d1   : > { %v806_v11 = vpop.f32.mrf.mxu0  ;;  %v809_v12 = vpop.f32.mrf.mxu1 }
 0x1d2   : > { %v618_v23 = vadd.f32 %v806_v11, %v489_v7  ;;  %v628_v32 = vadd.f32 %v809_v12, %v499_v31 }
 0x1d3   : > { %v622_v13 = vpop.f32.mrf.mxu1  ;;  %v612_v15 = vpop.f32.mrf.mxu0 }
 0x1d4   : > { %v613_v19 = vadd.f32 %v612_v15, %v484_v8  ;;  %v623_v27 = vadd.f32 %v622_v13, %v494_v17 }
 0x1d5   : > { %v812_v16 = vpop.f32.mrf.mxu1 }
 0x1d6   : > { %v638_v20 = vadd.f32 %v812_v16, %v509_v9 }
 0x1d7   : > { %v632_v18 = vpop.f32.mrf.mxu1 }
 0x1d8   : > { %v633_v21 = vadd.f32 %v632_v18, %v504_v10  ;;  %v652_v28 = vmul.f32 %v638_v20, %v618_v23 }
 0x1d9   : > { %v815_v22 = vpop.f32.mrf.mxu1 }
 0x1da   : > { %v651_v24 = vmul.f32 %v633_v21, %v613_v19  ;;  %v648_v29 = vadd.f32 %v815_v22, %v519_v25 }
 0x1db   : > { %v642_v26 = vpop.f32.mrf.mxu1 }
 0x1dc   : > { %v643_v30 = vadd.f32 %v642_v26, %v514_v14  ;;  %v655_v33 = vadd.f32 %v652_v28, %v651_v24  ;;  %v654_v35 = vmul.f32 %v648_v29, %v628_v32 }
 0x1de   : > { %v653_v34 = vmul.f32 %v643_v30, %v623_v27 }
 0x1e0   : > { %v656_v36 = vadd.f32 %v655_v33, %v653_v34 }
 0x1e2   : > { %v657_v37 = vadd.f32 %v656_v36, %v654_v35 }
 0x1e4   : > { %v658_v38 = vrot.slane %v657_v37, 4 }
 0x1e6   : > { %v659_v39 = vadd.f32 %v658_v38, %v657_v37 }
 0x1e8   : > { %v660_v40 = vrot.slane %v659_v39, 2 }
 0x1ea   : > { %v661_v41 = vadd.f32 %v660_v40, %v659_v39 }
 0x1ec   : > { %v662_v42 = vrot.slane %v661_v41, 1 }
 0x1ee   : > { %v663_v43 = vadd.f32 %v662_v42, %v661_v41 }
 0x1f0   : > { %664 = vst [vmem:[%s263_s17] sm:$0x1] %v663_v43 }
 0x1f1 PF: > { %p12_p9 = scmp.ge.s32.totalorder %s949_s22, 4   ;;  %s1104_s18 = smov %s895_s19 }
 0x1f2   : > { %s1105_s19 = smov %s958_s25  ;;  %s1106_s20 = smov %s949_s22 }
 0x1f3   :  { %14 = sbr.rel (!%p12_p9) target bundleno = 2 (0x2), region = 113 }

</bundles_post_ra>
